<compile_context>
chip_gen: v7x
topology: tpu7x:2x2x1
jax: 0.10.0
libtpu: 0.0.40
codegen_flags: <defaults>
</compile_context>

<pallas_src>
import functools

import jax
import jax.numpy as jnp
from jax.experimental import pallas as pl
from jax.experimental.pallas import tpu as pltpu


def _lstm_head_kernel(x_ref, wih_f_ref, whh_f_ref, b_f_ref,
                      wih_r_ref, b_r_ref,
                      gamma_ref, beta_ref, wlin_ref, blin_ref,
                      o_ref, *, eps):
    TB, T, H = x_ref.shape

    x = x_ref[...].astype(jnp.float32)             # (TB, T, H)
    wih_f = wih_f_ref[...].astype(jnp.float32)     # (H, 4H)
    whh_f = whh_f_ref[...].astype(jnp.float32)     # (H, 4H)
    b_f = b_f_ref[...].astype(jnp.float32)         # (1, 4H)

    def cell(gates, c_prev):
        # PyTorch gate order: i, f, g, o
        i_g = jax.nn.sigmoid(gates[:, 0 * H:1 * H])
        f_g = jax.nn.sigmoid(gates[:, 1 * H:2 * H])
        g_g = jnp.tanh(gates[:, 2 * H:3 * H])
        o_g = jax.nn.sigmoid(gates[:, 3 * H:4 * H])
        c_new = f_g * c_prev + i_g * g_g
        h_new = o_g * jnp.tanh(c_new)
        return h_new, c_new

    # ---- forward direction: full sequential scan (T static -> unrolled) ----
    h = jnp.zeros((TB, H), jnp.float32)
    c = jnp.zeros((TB, H), jnp.float32)
    for t in range(T):
        g = (jnp.dot(x[:, t, :], wih_f, preferred_element_type=jnp.float32)
             + jnp.dot(h, whh_f, preferred_element_type=jnp.float32)
             + b_f)
        h, c = cell(g, c)
    h_fwd = h

    # ---- reverse direction at the last timestep: one cell step, zero state ---
    wih_r = wih_r_ref[...].astype(jnp.float32)     # (H, 4H)
    b_r = b_r_ref[...].astype(jnp.float32)         # (1, 4H)
    g = jnp.dot(x[:, T - 1, :], wih_r, preferred_element_type=jnp.float32) + b_r
    h_bwd, _ = cell(g, jnp.zeros((TB, H), jnp.float32))

    feat = jnp.concatenate([h_fwd, h_bwd], axis=-1)    # (TB, 2H)

    # ---- LayerNorm over the 2H features --------------------------------------
    mean = jnp.mean(feat, axis=-1, keepdims=True)
    cent = feat - mean
    var = jnp.mean(cent * cent, axis=-1, keepdims=True)
    normed = cent * jax.lax.rsqrt(var + eps)
    normed = (normed * gamma_ref[...].astype(jnp.float32)
              + beta_ref[...].astype(jnp.float32))

    # ---- final Linear ---------------------------------------------------------
    out = (jnp.dot(normed, wlin_ref[...].astype(jnp.float32),
                   preferred_element_type=jnp.float32)
           + blin_ref[...].astype(jnp.float32))
    o_ref[...] = out.astype(o_ref.dtype)


@jax.jit
def lstm_head_forward(last_hidden_state, params):
    """Pallas implementation of LSTMHead.forward (inference)."""
    x = last_hidden_state
    B, T, H = x.shape

    # One-time (tiny) weight re-layout in the wrapper so every kernel matmul is
    # a plain lane-dense (rows, H) @ (H, 4H) dot.
    wih_f_t = params["weight_ih_l0"].T                                    # (H, 4H)
    whh_f_t = params["weight_hh_l0"].T                                    # (H, 4H)
    b_f = (params["bias_ih_l0"] + params["bias_hh_l0"]).reshape(1, 4 * H)
    wih_r_t = params["weight_ih_l0_reverse"].T                            # (H, 4H)
    b_r = (params["bias_ih_l0_reverse"]
           + params["bias_hh_l0_reverse"]).reshape(1, 4 * H)
    gamma = params["ln_weight"].reshape(1, 2 * H)
    beta = params["ln_bias"].reshape(1, 2 * H)
    wlin_t = params["linear_weight"].T                                    # (2H, O)
    O = wlin_t.shape[1]
    blin = params["linear_bias"].reshape(1, O)

    TB = B if B <= 128 else 128          # batch tile (full batch for small B)
    grid = (pl.cdiv(B, TB),)
    const2 = lambda b: (0, 0)

    out = pl.pallas_call(
        functools.partial(_lstm_head_kernel, eps=1e-5),
        out_shape=jax.ShapeDtypeStruct((B, O), x.dtype),
        grid=grid,
        in_specs=[
            pl.BlockSpec((TB, T, H), lambda b: (b, 0, 0)),   # activations
            pl.BlockSpec((H, 4 * H), const2),                # W_ih fwd (T)
            pl.BlockSpec((H, 4 * H), const2),                # W_hh fwd (T)
            pl.BlockSpec((1, 4 * H), const2),                # b_ih+b_hh fwd
            pl.BlockSpec((H, 4 * H), const2),                # W_ih rev (T)
            pl.BlockSpec((1, 4 * H), const2),                # b_ih+b_hh rev
            pl.BlockSpec((1, 2 * H), const2),                # LN gamma
            pl.BlockSpec((1, 2 * H), const2),                # LN beta
            pl.BlockSpec((2 * H, O), const2),                # Linear W (T)
            pl.BlockSpec((1, O), const2),                    # Linear b
        ],
        out_specs=pl.BlockSpec((TB, O), lambda b: (b, 0)),
        compiler_params=pltpu.CompilerParams(
            dimension_semantics=("parallel",),
        ),
    )(x, wih_f_t, whh_f_t, b_f, wih_r_t, b_r, gamma, beta, wlin_t, blin)
    return out


def _lstm_head_reference(x, params, eps=1e-5):
    """Plain-JAX reference with the full bidirectional scan (PyTorch semantics)."""
    B, T, H = x.shape

    def cell_step(xt, h, c, wih, whh, bih, bhh):
        g = xt @ wih.T + h @ whh.T + bih + bhh
        i = jax.nn.sigmoid(g[:, 0 * H:1 * H])
        f = jax.nn.sigmoid(g[:, 1 * H:2 * H])
        gg = jnp.tanh(g[:, 2 * H:3 * H])
        o = jax.nn.sigmoid(g[:, 3 * H:4 * H])
        c = f * c + i * gg
        h = o * jnp.tanh(c)
        return h, c

    h = jnp.zeros((B, H), x.dtype)
    c = jnp.zeros((B, H), x.dtype)
    fwd_out = []
    for t in range(T):
        h, c = cell_step(x[:, t], h, c,
                         params["weight_ih_l0"], params["weight_hh_l0"],
                         params["bias_ih_l0"], params["bias_hh_l0"])
        fwd_out.append(h)

    h = jnp.zeros((B, H), x.dtype)
    c = jnp.zeros((B, H), x.dtype)
    bwd_out = [None] * T
    for t in range(T - 1, -1, -1):
        h, c = cell_step(x[:, t], h, c,
                         params["weight_ih_l0_reverse"], params["weight_hh_l0_reverse"],
                         params["bias_ih_l0_reverse"], params["bias_hh_l0_reverse"])
        bwd_out[t] = h

    last = jnp.concatenate([fwd_out[-1], bwd_out[-1]], axis=-1)   # output[:, -1, :]
    mean = last.mean(-1, keepdims=True)
    var = ((last - mean) ** 2).mean(-1, keepdims=True)
    normed = (last - mean) / jnp.sqrt(var + eps)
    normed = normed * params["ln_weight"] + params["ln_bias"]
    return normed @ params["linear_weight"].T + params["linear_bias"]


if __name__ == "__main__":
    B, T, H, O = 2, 8, 32, 8          # batch=2, seq=8, in_features=32, out=8

    key = jax.random.PRNGKey(0)
    ks = jax.random.split(key, 13)
    bound = 1.0 / (H ** 0.5)
    u = lambda k, shape: jax.random.uniform(k, shape, jnp.float32, -bound, bound)

    x = jax.random.normal(ks[0], (B, T, H), jnp.float32)
    params = {
        "weight_ih_l0": u(ks[1], (4 * H, H)),
        "weight_hh_l0": u(ks[2], (4 * H, H)),
        "bias_ih_l0": u(ks[3], (4 * H,)),
        "bias_hh_l0": u(ks[4], (4 * H,)),
        "weight_ih_l0_reverse": u(ks[5], (4 * H, H)),
        "weight_hh_l0_reverse": u(ks[6], (4 * H, H)),
        "bias_ih_l0_reverse": u(ks[7], (4 * H,)),
        "bias_hh_l0_reverse": u(ks[8], (4 * H,)),
        "ln_weight": 1.0 + 0.1 * jax.random.normal(ks[9], (2 * H,), jnp.float32),
        "ln_bias": 0.1 * jax.random.normal(ks[10], (2 * H,), jnp.float32),
        "linear_weight": u(ks[11], (O, 2 * H)),
        "linear_bias": u(ks[12], (O,)),
    }

    out = lstm_head_forward(x, params)
    jax.block_until_ready(out)

    ref = _lstm_head_reference(x, params)
    assert out.shape == (B, O), out.shape
    assert jnp.allclose(out, ref, rtol=1e-4, atol=1e-4), (out, ref)

    print("KERNEL_OK")
</pallas_src>

<mosaic_0001>
module attributes {stable_mosaic.version = 11 : i64} {
  func.func @_lstm_head_kernel(%arg0: i32, %arg1: memref<2x8x32xf32, #tpu.memory_space<vmem>>, %arg2: memref<32x128xf32, #tpu.memory_space<vmem>>, %arg3: memref<32x128xf32, #tpu.memory_space<vmem>>, %arg4: memref<1x128xf32, #tpu.memory_space<vmem>>, %arg5: memref<32x128xf32, #tpu.memory_space<vmem>>, %arg6: memref<1x128xf32, #tpu.memory_space<vmem>>, %arg7: memref<1x64xf32, #tpu.memory_space<vmem>>, %arg8: memref<1x64xf32, #tpu.memory_space<vmem>>, %arg9: memref<64x8xf32, #tpu.memory_space<vmem>>, %arg10: memref<1x8xf32, #tpu.memory_space<vmem>>, %arg11: memref<2x8xf32, #tpu.memory_space<vmem>>) attributes {dimension_semantics = [#tpu.dimension_semantics<parallel>], iteration_bounds = array<i64: 1>, scalar_prefetch = 0 : i64, scratch_operands = 0 : i64, tpu.core_type = #tpu.core_type<tc>, window_params = [{transform_indices = @transform_0, window_bounds = array<i64: 2, 8, 32>}, {pipeline_mode = #tpu.pipeline_mode<synchronous>, transform_indices = @transform_1, window_bounds = array<i64: 32, 128>}, {pipeline_mode = #tpu.pipeline_mode<synchronous>, transform_indices = @transform_2, window_bounds = array<i64: 32, 128>}, {pipeline_mode = #tpu.pipeline_mode<synchronous>, transform_indices = @transform_3, window_bounds = array<i64: 1, 128>}, {pipeline_mode = #tpu.pipeline_mode<synchronous>, transform_indices = @transform_4, window_bounds = array<i64: 32, 128>}, {pipeline_mode = #tpu.pipeline_mode<synchronous>, transform_indices = @transform_5, window_bounds = array<i64: 1, 128>}, {pipeline_mode = #tpu.pipeline_mode<synchronous>, transform_indices = @transform_6, window_bounds = array<i64: 1, 64>}, {pipeline_mode = #tpu.pipeline_mode<synchronous>, transform_indices = @transform_7, window_bounds = array<i64: 1, 64>}, {pipeline_mode = #tpu.pipeline_mode<synchronous>, transform_indices = @transform_8, window_bounds = array<i64: 64, 8>}, {pipeline_mode = #tpu.pipeline_mode<synchronous>, transform_indices = @transform_9, window_bounds = array<i64: 1, 8>}, {transform_indices = @transform_10, window_bounds = array<i64: 2, 8>}]} {
    %c0 = arith.constant 0 : index
    %c0_0 = arith.constant 0 : index
    %c0_1 = arith.constant 0 : index
    %0 = vector.load %arg1[%c0, %c0_0, %c0_1] : memref<2x8x32xf32, #tpu.memory_space<vmem>>, vector<2x8x32xf32>
    %c0_2 = arith.constant 0 : index
    %c0_3 = arith.constant 0 : index
    %1 = vector.load %arg2[%c0_2, %c0_3] : memref<32x128xf32, #tpu.memory_space<vmem>>, vector<32x128xf32>
    %c0_4 = arith.constant 0 : index
    %c0_5 = arith.constant 0 : index
    %2 = vector.load %arg3[%c0_4, %c0_5] : memref<32x128xf32, #tpu.memory_space<vmem>>, vector<32x128xf32>
    %c0_6 = arith.constant 0 : index
    %c0_7 = arith.constant 0 : index
    %3 = vector.load %arg4[%c0_6, %c0_7] : memref<1x128xf32, #tpu.memory_space<vmem>>, vector<1x128xf32>
    %cst = arith.constant 0.000000e+00 : f32
    %4 = vector.broadcast %cst : f32 to vector<2x32xf32>
    %cst_8 = arith.constant 0.000000e+00 : f32
    %5 = vector.broadcast %cst_8 : f32 to vector<2x32xf32>
    %6 = vector.extract_strided_slice %0 {offsets = [0, 0, 0], sizes = [2, 1, 32], strides = [1, 1, 1]} : vector<2x8x32xf32> to vector<2x1x32xf32>
    %7 = vector.shape_cast %6 : vector<2x1x32xf32> to vector<2x32xf32>
    %cst_9 = arith.constant dense<0.000000e+00> : vector<2x128xf32>
    %8 = tpu.matmul %7, %1, %cst_9 {dimension_numbers = #tpu.dot_dimension_numbers<[1], [0], [0], [1], [0, 0, 1, 1], [], []>} : vector<2x32xf32>, vector<32x128xf32>, vector<2x128xf32> -> vector<2x128xf32>
    %cst_10 = arith.constant dense<0.000000e+00> : vector<2x128xf32>
    %9 = tpu.matmul %4, %2, %cst_10 {dimension_numbers = #tpu.dot_dimension_numbers<[1], [0], [0], [1], [0, 0, 1, 1], [], []>} : vector<2x32xf32>, vector<32x128xf32>, vector<2x128xf32> -> vector<2x128xf32>
    %10 = arith.addf %8, %9 : vector<2x128xf32>
    %11 = vector.broadcast %3 : vector<1x128xf32> to vector<2x128xf32>
    %12 = arith.addf %10, %11 : vector<2x128xf32>
    %13 = vector.extract_strided_slice %12 {offsets = [0, 0], sizes = [2, 32], strides = [1, 1]} : vector<2x128xf32> to vector<2x32xf32>
    %14 = arith.negf %13 : vector<2x32xf32>
    %15 = math.exp %14 : vector<2x32xf32>
    %cst_11 = arith.constant 1.000000e+00 : f32
    %16 = vector.broadcast %cst_11 : f32 to vector<2x32xf32>
    %17 = arith.addf %16, %15 : vector<2x32xf32>
    %18 = arith.divf %16, %17 : vector<2x32xf32>
    %19 = vector.extract_strided_slice %12 {offsets = [0, 32], sizes = [2, 32], strides = [1, 1]} : vector<2x128xf32> to vector<2x32xf32>
    %20 = arith.negf %19 : vector<2x32xf32>
    %21 = math.exp %20 : vector<2x32xf32>
    %cst_12 = arith.constant 1.000000e+00 : f32
    %22 = vector.broadcast %cst_12 : f32 to vector<2x32xf32>
    %23 = arith.addf %22, %21 : vector<2x32xf32>
    %24 = arith.divf %22, %23 : vector<2x32xf32>
    %25 = vector.extract_strided_slice %12 {offsets = [0, 64], sizes = [2, 32], strides = [1, 1]} : vector<2x128xf32> to vector<2x32xf32>
    %26 = math.tanh %25 : vector<2x32xf32>
    %27 = vector.extract_strided_slice %12 {offsets = [0, 96], sizes = [2, 32], strides = [1, 1]} : vector<2x128xf32> to vector<2x32xf32>
    %28 = arith.negf %27 : vector<2x32xf32>
    %29 = math.exp %28 : vector<2x32xf32>
    %cst_13 = arith.constant 1.000000e+00 : f32
    %30 = vector.broadcast %cst_13 : f32 to vector<2x32xf32>
    %31 = arith.addf %30, %29 : vector<2x32xf32>
    %32 = arith.divf %30, %31 : vector<2x32xf32>
    %33 = arith.mulf %24, %5 : vector<2x32xf32>
    %34 = arith.mulf %18, %26 : vector<2x32xf32>
    %35 = arith.addf %33, %34 : vector<2x32xf32>
    %36 = math.tanh %35 : vector<2x32xf32>
    %37 = arith.mulf %32, %36 : vector<2x32xf32>
    %38 = vector.extract_strided_slice %0 {offsets = [0, 1, 0], sizes = [2, 1, 32], strides = [1, 1, 1]} : vector<2x8x32xf32> to vector<2x1x32xf32>
    %39 = vector.shape_cast %38 : vector<2x1x32xf32> to vector<2x32xf32>
    %cst_14 = arith.constant dense<0.000000e+00> : vector<2x128xf32>
    %40 = tpu.matmul %39, %1, %cst_14 {dimension_numbers = #tpu.dot_dimension_numbers<[1], [0], [0], [1], [0, 0, 1, 1], [], []>} : vector<2x32xf32>, vector<32x128xf32>, vector<2x128xf32> -> vector<2x128xf32>
    %cst_15 = arith.constant dense<0.000000e+00> : vector<2x128xf32>
    %41 = tpu.matmul %37, %2, %cst_15 {dimension_numbers = #tpu.dot_dimension_numbers<[1], [0], [0], [1], [0, 0, 1, 1], [], []>} : vector<2x32xf32>, vector<32x128xf32>, vector<2x128xf32> -> vector<2x128xf32>
    %42 = arith.addf %40, %41 : vector<2x128xf32>
    %43 = vector.broadcast %3 : vector<1x128xf32> to vector<2x128xf32>
    %44 = arith.addf %42, %43 : vector<2x128xf32>
    %45 = vector.extract_strided_slice %44 {offsets = [0, 0], sizes = [2, 32], strides = [1, 1]} : vector<2x128xf32> to vector<2x32xf32>
    %46 = arith.negf %45 : vector<2x32xf32>
    %47 = math.exp %46 : vector<2x32xf32>
    %cst_16 = arith.constant 1.000000e+00 : f32
    %48 = vector.broadcast %cst_16 : f32 to vector<2x32xf32>
    %49 = arith.addf %48, %47 : vector<2x32xf32>
    %50 = arith.divf %48, %49 : vector<2x32xf32>
    %51 = vector.extract_strided_slice %44 {offsets = [0, 32], sizes = [2, 32], strides = [1, 1]} : vector<2x128xf32> to vector<2x32xf32>
    %52 = arith.negf %51 : vector<2x32xf32>
    %53 = math.exp %52 : vector<2x32xf32>
    %cst_17 = arith.constant 1.000000e+00 : f32
    %54 = vector.broadcast %cst_17 : f32 to vector<2x32xf32>
    %55 = arith.addf %54, %53 : vector<2x32xf32>
    %56 = arith.divf %54, %55 : vector<2x32xf32>
    %57 = vector.extract_strided_slice %44 {offsets = [0, 64], sizes = [2, 32], strides = [1, 1]} : vector<2x128xf32> to vector<2x32xf32>
    %58 = math.tanh %57 : vector<2x32xf32>
    %59 = vector.extract_strided_slice %44 {offsets = [0, 96], sizes = [2, 32], strides = [1, 1]} : vector<2x128xf32> to vector<2x32xf32>
    %60 = arith.negf %59 : vector<2x32xf32>
    %61 = math.exp %60 : vector<2x32xf32>
    %cst_18 = arith.constant 1.000000e+00 : f32
    %62 = vector.broadcast %cst_18 : f32 to vector<2x32xf32>
    %63 = arith.addf %62, %61 : vector<2x32xf32>
    %64 = arith.divf %62, %63 : vector<2x32xf32>
    %65 = arith.mulf %56, %35 : vector<2x32xf32>
    %66 = arith.mulf %50, %58 : vector<2x32xf32>
    %67 = arith.addf %65, %66 : vector<2x32xf32>
    %68 = math.tanh %67 : vector<2x32xf32>
    %69 = arith.mulf %64, %68 : vector<2x32xf32>
    %70 = vector.extract_strided_slice %0 {offsets = [0, 2, 0], sizes = [2, 1, 32], strides = [1, 1, 1]} : vector<2x8x32xf32> to vector<2x1x32xf32>
    %71 = vector.shape_cast %70 : vector<2x1x32xf32> to vector<2x32xf32>
    %cst_19 = arith.constant dense<0.000000e+00> : vector<2x128xf32>
    %72 = tpu.matmul %71, %1, %cst_19 {dimension_numbers = #tpu.dot_dimension_numbers<[1], [0], [0], [1], [0, 0, 1, 1], [], []>} : vector<2x32xf32>, vector<32x128xf32>, vector<2x128xf32> -> vector<2x128xf32>
    %cst_20 = arith.constant dense<0.000000e+00> : vector<2x128xf32>
    %73 = tpu.matmul %69, %2, %cst_20 {dimension_numbers = #tpu.dot_dimension_numbers<[1], [0], [0], [1], [0, 0, 1, 1], [], []>} : vector<2x32xf32>, vector<32x128xf32>, vector<2x128xf32> -> vector<2x128xf32>
    %74 = arith.addf %72, %73 : vector<2x128xf32>
    %75 = vector.broadcast %3 : vector<1x128xf32> to vector<2x128xf32>
    %76 = arith.addf %74, %75 : vector<2x128xf32>
    %77 = vector.extract_strided_slice %76 {offsets = [0, 0], sizes = [2, 32], strides = [1, 1]} : vector<2x128xf32> to vector<2x32xf32>
    %78 = arith.negf %77 : vector<2x32xf32>
    %79 = math.exp %78 : vector<2x32xf32>
    %cst_21 = arith.constant 1.000000e+00 : f32
    %80 = vector.broadcast %cst_21 : f32 to vector<2x32xf32>
    %81 = arith.addf %80, %79 : vector<2x32xf32>
    %82 = arith.divf %80, %81 : vector<2x32xf32>
    %83 = vector.extract_strided_slice %76 {offsets = [0, 32], sizes = [2, 32], strides = [1, 1]} : vector<2x128xf32> to vector<2x32xf32>
    %84 = arith.negf %83 : vector<2x32xf32>
    %85 = math.exp %84 : vector<2x32xf32>
    %cst_22 = arith.constant 1.000000e+00 : f32
    %86 = vector.broadcast %cst_22 : f32 to vector<2x32xf32>
    %87 = arith.addf %86, %85 : vector<2x32xf32>
    %88 = arith.divf %86, %87 : vector<2x32xf32>
    %89 = vector.extract_strided_slice %76 {offsets = [0, 64], sizes = [2, 32], strides = [1, 1]} : vector<2x128xf32> to vector<2x32xf32>
    %90 = math.tanh %89 : vector<2x32xf32>
    %91 = vector.extract_strided_slice %76 {offsets = [0, 96], sizes = [2, 32], strides = [1, 1]} : vector<2x128xf32> to vector<2x32xf32>
    %92 = arith.negf %91 : vector<2x32xf32>
    %93 = math.exp %92 : vector<2x32xf32>
    %cst_23 = arith.constant 1.000000e+00 : f32
    %94 = vector.broadcast %cst_23 : f32 to vector<2x32xf32>
    %95 = arith.addf %94, %93 : vector<2x32xf32>
    %96 = arith.divf %94, %95 : vector<2x32xf32>
    %97 = arith.mulf %88, %67 : vector<2x32xf32>
    %98 = arith.mulf %82, %90 : vector<2x32xf32>
    %99 = arith.addf %97, %98 : vector<2x32xf32>
    %100 = math.tanh %99 : vector<2x32xf32>
    %101 = arith.mulf %96, %100 : vector<2x32xf32>
    %102 = vector.extract_strided_slice %0 {offsets = [0, 3, 0], sizes = [2, 1, 32], strides = [1, 1, 1]} : vector<2x8x32xf32> to vector<2x1x32xf32>
    %103 = vector.shape_cast %102 : vector<2x1x32xf32> to vector<2x32xf32>
    %cst_24 = arith.constant dense<0.000000e+00> : vector<2x128xf32>
    %104 = tpu.matmul %103, %1, %cst_24 {dimension_numbers = #tpu.dot_dimension_numbers<[1], [0], [0], [1], [0, 0, 1, 1], [], []>} : vector<2x32xf32>, vector<32x128xf32>, vector<2x128xf32> -> vector<2x128xf32>
    %cst_25 = arith.constant dense<0.000000e+00> : vector<2x128xf32>
    %105 = tpu.matmul %101, %2, %cst_25 {dimension_numbers = #tpu.dot_dimension_numbers<[1], [0], [0], [1], [0, 0, 1, 1], [], []>} : vector<2x32xf32>, vector<32x128xf32>, vector<2x128xf32> -> vector<2x128xf32>
    %106 = arith.addf %104, %105 : vector<2x128xf32>
    %107 = vector.broadcast %3 : vector<1x128xf32> to vector<2x128xf32>
    %108 = arith.addf %106, %107 : vector<2x128xf32>
    %109 = vector.extract_strided_slice %108 {offsets = [0, 0], sizes = [2, 32], strides = [1, 1]} : vector<2x128xf32> to vector<2x32xf32>
    %110 = arith.negf %109 : vector<2x32xf32>
    %111 = math.exp %110 : vector<2x32xf32>
    %cst_26 = arith.constant 1.000000e+00 : f32
    %112 = vector.broadcast %cst_26 : f32 to vector<2x32xf32>
    %113 = arith.addf %112, %111 : vector<2x32xf32>
    %114 = arith.divf %112, %113 : vector<2x32xf32>
    %115 = vector.extract_strided_slice %108 {offsets = [0, 32], sizes = [2, 32], strides = [1, 1]} : vector<2x128xf32> to vector<2x32xf32>
    %116 = arith.negf %115 : vector<2x32xf32>
    %117 = math.exp %116 : vector<2x32xf32>
    %cst_27 = arith.constant 1.000000e+00 : f32
    %118 = vector.broadcast %cst_27 : f32 to vector<2x32xf32>
    %119 = arith.addf %118, %117 : vector<2x32xf32>
    %120 = arith.divf %118, %119 : vector<2x32xf32>
    %121 = vector.extract_strided_slice %108 {offsets = [0, 64], sizes = [2, 32], strides = [1, 1]} : vector<2x128xf32> to vector<2x32xf32>
    %122 = math.tanh %121 : vector<2x32xf32>
    %123 = vector.extract_strided_slice %108 {offsets = [0, 96], sizes = [2, 32], strides = [1, 1]} : vector<2x128xf32> to vector<2x32xf32>
    %124 = arith.negf %123 : vector<2x32xf32>
    %125 = math.exp %124 : vector<2x32xf32>
    %cst_28 = arith.constant 1.000000e+00 : f32
    %126 = vector.broadcast %cst_28 : f32 to vector<2x32xf32>
    %127 = arith.addf %126, %125 : vector<2x32xf32>
    %128 = arith.divf %126, %127 : vector<2x32xf32>
    %129 = arith.mulf %120, %99 : vector<2x32xf32>
    %130 = arith.mulf %114, %122 : vector<2x32xf32>
    %131 = arith.addf %129, %130 : vector<2x32xf32>
    %132 = math.tanh %131 : vector<2x32xf32>
    %133 = arith.mulf %128, %132 : vector<2x32xf32>
    %134 = vector.extract_strided_slice %0 {offsets = [0, 4, 0], sizes = [2, 1, 32], strides = [1, 1, 1]} : vector<2x8x32xf32> to vector<2x1x32xf32>
    %135 = vector.shape_cast %134 : vector<2x1x32xf32> to vector<2x32xf32>
    %cst_29 = arith.constant dense<0.000000e+00> : vector<2x128xf32>
    %136 = tpu.matmul %135, %1, %cst_29 {dimension_numbers = #tpu.dot_dimension_numbers<[1], [0], [0], [1], [0, 0, 1, 1], [], []>} : vector<2x32xf32>, vector<32x128xf32>, vector<2x128xf32> -> vector<2x128xf32>
    %cst_30 = arith.constant dense<0.000000e+00> : vector<2x128xf32>
    %137 = tpu.matmul %133, %2, %cst_30 {dimension_numbers = #tpu.dot_dimension_numbers<[1], [0], [0], [1], [0, 0, 1, 1], [], []>} : vector<2x32xf32>, vector<32x128xf32>, vector<2x128xf32> -> vector<2x128xf32>
    %138 = arith.addf %136, %137 : vector<2x128xf32>
    %139 = vector.broadcast %3 : vector<1x128xf32> to vector<2x128xf32>
    %140 = arith.addf %138, %139 : vector<2x128xf32>
    %141 = vector.extract_strided_slice %140 {offsets = [0, 0], sizes = [2, 32], strides = [1, 1]} : vector<2x128xf32> to vector<2x32xf32>
    %142 = arith.negf %141 : vector<2x32xf32>
    %143 = math.exp %142 : vector<2x32xf32>
    %cst_31 = arith.constant 1.000000e+00 : f32
    %144 = vector.broadcast %cst_31 : f32 to vector<2x32xf32>
    %145 = arith.addf %144, %143 : vector<2x32xf32>
    %146 = arith.divf %144, %145 : vector<2x32xf32>
    %147 = vector.extract_strided_slice %140 {offsets = [0, 32], sizes = [2, 32], strides = [1, 1]} : vector<2x128xf32> to vector<2x32xf32>
    %148 = arith.negf %147 : vector<2x32xf32>
    %149 = math.exp %148 : vector<2x32xf32>
    %cst_32 = arith.constant 1.000000e+00 : f32
    %150 = vector.broadcast %cst_32 : f32 to vector<2x32xf32>
    %151 = arith.addf %150, %149 : vector<2x32xf32>
    %152 = arith.divf %150, %151 : vector<2x32xf32>
    %153 = vector.extract_strided_slice %140 {offsets = [0, 64], sizes = [2, 32], strides = [1, 1]} : vector<2x128xf32> to vector<2x32xf32>
    %154 = math.tanh %153 : vector<2x32xf32>
    %155 = vector.extract_strided_slice %140 {offsets = [0, 96], sizes = [2, 32], strides = [1, 1]} : vector<2x128xf32> to vector<2x32xf32>
    %156 = arith.negf %155 : vector<2x32xf32>
    %157 = math.exp %156 : vector<2x32xf32>
    %cst_33 = arith.constant 1.000000e+00 : f32
    %158 = vector.broadcast %cst_33 : f32 to vector<2x32xf32>
    %159 = arith.addf %158, %157 : vector<2x32xf32>
    %160 = arith.divf %158, %159 : vector<2x32xf32>
    %161 = arith.mulf %152, %131 : vector<2x32xf32>
    %162 = arith.mulf %146, %154 : vector<2x32xf32>
    %163 = arith.addf %161, %162 : vector<2x32xf32>
    %164 = math.tanh %163 : vector<2x32xf32>
    %165 = arith.mulf %160, %164 : vector<2x32xf32>
    %166 = vector.extract_strided_slice %0 {offsets = [0, 5, 0], sizes = [2, 1, 32], strides = [1, 1, 1]} : vector<2x8x32xf32> to vector<2x1x32xf32>
    %167 = vector.shape_cast %166 : vector<2x1x32xf32> to vector<2x32xf32>
    %cst_34 = arith.constant dense<0.000000e+00> : vector<2x128xf32>
    %168 = tpu.matmul %167, %1, %cst_34 {dimension_numbers = #tpu.dot_dimension_numbers<[1], [0], [0], [1], [0, 0, 1, 1], [], []>} : vector<2x32xf32>, vector<32x128xf32>, vector<2x128xf32> -> vector<2x128xf32>
    %cst_35 = arith.constant dense<0.000000e+00> : vector<2x128xf32>
    %169 = tpu.matmul %165, %2, %cst_35 {dimension_numbers = #tpu.dot_dimension_numbers<[1], [0], [0], [1], [0, 0, 1, 1], [], []>} : vector<2x32xf32>, vector<32x128xf32>, vector<2x128xf32> -> vector<2x128xf32>
    %170 = arith.addf %168, %169 : vector<2x128xf32>
    %171 = vector.broadcast %3 : vector<1x128xf32> to vector<2x128xf32>
    %172 = arith.addf %170, %171 : vector<2x128xf32>
    %173 = vector.extract_strided_slice %172 {offsets = [0, 0], sizes = [2, 32], strides = [1, 1]} : vector<2x128xf32> to vector<2x32xf32>
    %174 = arith.negf %173 : vector<2x32xf32>
    %175 = math.exp %174 : vector<2x32xf32>
    %cst_36 = arith.constant 1.000000e+00 : f32
    %176 = vector.broadcast %cst_36 : f32 to vector<2x32xf32>
    %177 = arith.addf %176, %175 : vector<2x32xf32>
    %178 = arith.divf %176, %177 : vector<2x32xf32>
    %179 = vector.extract_strided_slice %172 {offsets = [0, 32], sizes = [2, 32], strides = [1, 1]} : vector<2x128xf32> to vector<2x32xf32>
    %180 = arith.negf %179 : vector<2x32xf32>
    %181 = math.exp %180 : vector<2x32xf32>
    %cst_37 = arith.constant 1.000000e+00 : f32
    %182 = vector.broadcast %cst_37 : f32 to vector<2x32xf32>
    %183 = arith.addf %182, %181 : vector<2x32xf32>
    %184 = arith.divf %182, %183 : vector<2x32xf32>
    %185 = vector.extract_strided_slice %172 {offsets = [0, 64], sizes = [2, 32], strides = [1, 1]} : vector<2x128xf32> to vector<2x32xf32>
    %186 = math.tanh %185 : vector<2x32xf32>
    %187 = vector.extract_strided_slice %172 {offsets = [0, 96], sizes = [2, 32], strides = [1, 1]} : vector<2x128xf32> to vector<2x32xf32>
    %188 = arith.negf %187 : vector<2x32xf32>
    %189 = math.exp %188 : vector<2x32xf32>
    %cst_38 = arith.constant 1.000000e+00 : f32
    %190 = vector.broadcast %cst_38 : f32 to vector<2x32xf32>
    %191 = arith.addf %190, %189 : vector<2x32xf32>
    %192 = arith.divf %190, %191 : vector<2x32xf32>
    %193 = arith.mulf %184, %163 : vector<2x32xf32>
    %194 = arith.mulf %178, %186 : vector<2x32xf32>
    %195 = arith.addf %193, %194 : vector<2x32xf32>
    %196 = math.tanh %195 : vector<2x32xf32>
    %197 = arith.mulf %192, %196 : vector<2x32xf32>
    %198 = vector.extract_strided_slice %0 {offsets = [0, 6, 0], sizes = [2, 1, 32], strides = [1, 1, 1]} : vector<2x8x32xf32> to vector<2x1x32xf32>
    %199 = vector.shape_cast %198 : vector<2x1x32xf32> to vector<2x32xf32>
    %cst_39 = arith.constant dense<0.000000e+00> : vector<2x128xf32>
    %200 = tpu.matmul %199, %1, %cst_39 {dimension_numbers = #tpu.dot_dimension_numbers<[1], [0], [0], [1], [0, 0, 1, 1], [], []>} : vector<2x32xf32>, vector<32x128xf32>, vector<2x128xf32> -> vector<2x128xf32>
    %cst_40 = arith.constant dense<0.000000e+00> : vector<2x128xf32>
    %201 = tpu.matmul %197, %2, %cst_40 {dimension_numbers = #tpu.dot_dimension_numbers<[1], [0], [0], [1], [0, 0, 1, 1], [], []>} : vector<2x32xf32>, vector<32x128xf32>, vector<2x128xf32> -> vector<2x128xf32>
    %202 = arith.addf %200, %201 : vector<2x128xf32>
    %203 = vector.broadcast %3 : vector<1x128xf32> to vector<2x128xf32>
    %204 = arith.addf %202, %203 : vector<2x128xf32>
    %205 = vector.extract_strided_slice %204 {offsets = [0, 0], sizes = [2, 32], strides = [1, 1]} : vector<2x128xf32> to vector<2x32xf32>
    %206 = arith.negf %205 : vector<2x32xf32>
    %207 = math.exp %206 : vector<2x32xf32>
    %cst_41 = arith.constant 1.000000e+00 : f32
    %208 = vector.broadcast %cst_41 : f32 to vector<2x32xf32>
    %209 = arith.addf %208, %207 : vector<2x32xf32>
    %210 = arith.divf %208, %209 : vector<2x32xf32>
    %211 = vector.extract_strided_slice %204 {offsets = [0, 32], sizes = [2, 32], strides = [1, 1]} : vector<2x128xf32> to vector<2x32xf32>
    %212 = arith.negf %211 : vector<2x32xf32>
    %213 = math.exp %212 : vector<2x32xf32>
    %cst_42 = arith.constant 1.000000e+00 : f32
    %214 = vector.broadcast %cst_42 : f32 to vector<2x32xf32>
    %215 = arith.addf %214, %213 : vector<2x32xf32>
    %216 = arith.divf %214, %215 : vector<2x32xf32>
    %217 = vector.extract_strided_slice %204 {offsets = [0, 64], sizes = [2, 32], strides = [1, 1]} : vector<2x128xf32> to vector<2x32xf32>
    %218 = math.tanh %217 : vector<2x32xf32>
    %219 = vector.extract_strided_slice %204 {offsets = [0, 96], sizes = [2, 32], strides = [1, 1]} : vector<2x128xf32> to vector<2x32xf32>
    %220 = arith.negf %219 : vector<2x32xf32>
    %221 = math.exp %220 : vector<2x32xf32>
    %cst_43 = arith.constant 1.000000e+00 : f32
    %222 = vector.broadcast %cst_43 : f32 to vector<2x32xf32>
    %223 = arith.addf %222, %221 : vector<2x32xf32>
    %224 = arith.divf %222, %223 : vector<2x32xf32>
    %225 = arith.mulf %216, %195 : vector<2x32xf32>
    %226 = arith.mulf %210, %218 : vector<2x32xf32>
    %227 = arith.addf %225, %226 : vector<2x32xf32>
    %228 = math.tanh %227 : vector<2x32xf32>
    %229 = arith.mulf %224, %228 : vector<2x32xf32>
    %230 = vector.extract_strided_slice %0 {offsets = [0, 7, 0], sizes = [2, 1, 32], strides = [1, 1, 1]} : vector<2x8x32xf32> to vector<2x1x32xf32>
    %231 = vector.shape_cast %230 : vector<2x1x32xf32> to vector<2x32xf32>
    %cst_44 = arith.constant dense<0.000000e+00> : vector<2x128xf32>
    %232 = tpu.matmul %231, %1, %cst_44 {dimension_numbers = #tpu.dot_dimension_numbers<[1], [0], [0], [1], [0, 0, 1, 1], [], []>} : vector<2x32xf32>, vector<32x128xf32>, vector<2x128xf32> -> vector<2x128xf32>
    %cst_45 = arith.constant dense<0.000000e+00> : vector<2x128xf32>
    %233 = tpu.matmul %229, %2, %cst_45 {dimension_numbers = #tpu.dot_dimension_numbers<[1], [0], [0], [1], [0, 0, 1, 1], [], []>} : vector<2x32xf32>, vector<32x128xf32>, vector<2x128xf32> -> vector<2x128xf32>
    %234 = arith.addf %232, %233 : vector<2x128xf32>
    %235 = vector.broadcast %3 : vector<1x128xf32> to vector<2x128xf32>
    %236 = arith.addf %234, %235 : vector<2x128xf32>
    %237 = vector.extract_strided_slice %236 {offsets = [0, 0], sizes = [2, 32], strides = [1, 1]} : vector<2x128xf32> to vector<2x32xf32>
    %238 = arith.negf %237 : vector<2x32xf32>
    %239 = math.exp %238 : vector<2x32xf32>
    %cst_46 = arith.constant 1.000000e+00 : f32
    %240 = vector.broadcast %cst_46 : f32 to vector<2x32xf32>
    %241 = arith.addf %240, %239 : vector<2x32xf32>
    %242 = arith.divf %240, %241 : vector<2x32xf32>
    %243 = vector.extract_strided_slice %236 {offsets = [0, 32], sizes = [2, 32], strides = [1, 1]} : vector<2x128xf32> to vector<2x32xf32>
    %244 = arith.negf %243 : vector<2x32xf32>
    %245 = math.exp %244 : vector<2x32xf32>
    %cst_47 = arith.constant 1.000000e+00 : f32
    %246 = vector.broadcast %cst_47 : f32 to vector<2x32xf32>
    %247 = arith.addf %246, %245 : vector<2x32xf32>
    %248 = arith.divf %246, %247 : vector<2x32xf32>
    %249 = vector.extract_strided_slice %236 {offsets = [0, 64], sizes = [2, 32], strides = [1, 1]} : vector<2x128xf32> to vector<2x32xf32>
    %250 = math.tanh %249 : vector<2x32xf32>
    %251 = vector.extract_strided_slice %236 {offsets = [0, 96], sizes = [2, 32], strides = [1, 1]} : vector<2x128xf32> to vector<2x32xf32>
    %252 = arith.negf %251 : vector<2x32xf32>
    %253 = math.exp %252 : vector<2x32xf32>
    %cst_48 = arith.constant 1.000000e+00 : f32
    %254 = vector.broadcast %cst_48 : f32 to vector<2x32xf32>
    %255 = arith.addf %254, %253 : vector<2x32xf32>
    %256 = arith.divf %254, %255 : vector<2x32xf32>
    %257 = arith.mulf %248, %227 : vector<2x32xf32>
    %258 = arith.mulf %242, %250 : vector<2x32xf32>
    %259 = arith.addf %257, %258 : vector<2x32xf32>
    %260 = math.tanh %259 : vector<2x32xf32>
    %261 = arith.mulf %256, %260 : vector<2x32xf32>
    %c0_49 = arith.constant 0 : index
    %c0_50 = arith.constant 0 : index
    %262 = vector.load %arg5[%c0_49, %c0_50] : memref<32x128xf32, #tpu.memory_space<vmem>>, vector<32x128xf32>
    %c0_51 = arith.constant 0 : index
    %c0_52 = arith.constant 0 : index
    %263 = vector.load %arg6[%c0_51, %c0_52] : memref<1x128xf32, #tpu.memory_space<vmem>>, vector<1x128xf32>
    %264 = vector.extract_strided_slice %0 {offsets = [0, 7, 0], sizes = [2, 1, 32], strides = [1, 1, 1]} : vector<2x8x32xf32> to vector<2x1x32xf32>
    %265 = vector.shape_cast %264 : vector<2x1x32xf32> to vector<2x32xf32>
    %cst_53 = arith.constant dense<0.000000e+00> : vector<2x128xf32>
    %266 = tpu.matmul %265, %262, %cst_53 {dimension_numbers = #tpu.dot_dimension_numbers<[1], [0], [0], [1], [0, 0, 1, 1], [], []>} : vector<2x32xf32>, vector<32x128xf32>, vector<2x128xf32> -> vector<2x128xf32>
    %267 = vector.broadcast %263 : vector<1x128xf32> to vector<2x128xf32>
    %268 = arith.addf %266, %267 : vector<2x128xf32>
    %cst_54 = arith.constant 0.000000e+00 : f32
    %269 = vector.broadcast %cst_54 : f32 to vector<2x32xf32>
    %270 = vector.extract_strided_slice %268 {offsets = [0, 0], sizes = [2, 32], strides = [1, 1]} : vector<2x128xf32> to vector<2x32xf32>
    %271 = arith.negf %270 : vector<2x32xf32>
    %272 = math.exp %271 : vector<2x32xf32>
    %cst_55 = arith.constant 1.000000e+00 : f32
    %273 = vector.broadcast %cst_55 : f32 to vector<2x32xf32>
    %274 = arith.addf %273, %272 : vector<2x32xf32>
    %275 = arith.divf %273, %274 : vector<2x32xf32>
    %276 = vector.extract_strided_slice %268 {offsets = [0, 32], sizes = [2, 32], strides = [1, 1]} : vector<2x128xf32> to vector<2x32xf32>
    %277 = arith.negf %276 : vector<2x32xf32>
    %278 = math.exp %277 : vector<2x32xf32>
    %cst_56 = arith.constant 1.000000e+00 : f32
    %279 = vector.broadcast %cst_56 : f32 to vector<2x32xf32>
    %280 = arith.addf %279, %278 : vector<2x32xf32>
    %281 = arith.divf %279, %280 : vector<2x32xf32>
    %282 = vector.extract_strided_slice %268 {offsets = [0, 64], sizes = [2, 32], strides = [1, 1]} : vector<2x128xf32> to vector<2x32xf32>
    %283 = math.tanh %282 : vector<2x32xf32>
    %284 = vector.extract_strided_slice %268 {offsets = [0, 96], sizes = [2, 32], strides = [1, 1]} : vector<2x128xf32> to vector<2x32xf32>
    %285 = arith.negf %284 : vector<2x32xf32>
    %286 = math.exp %285 : vector<2x32xf32>
    %cst_57 = arith.constant 1.000000e+00 : f32
    %287 = vector.broadcast %cst_57 : f32 to vector<2x32xf32>
    %288 = arith.addf %287, %286 : vector<2x32xf32>
    %289 = arith.divf %287, %288 : vector<2x32xf32>
    %290 = arith.mulf %281, %269 : vector<2x32xf32>
    %291 = arith.mulf %275, %283 : vector<2x32xf32>
    %292 = arith.addf %290, %291 : vector<2x32xf32>
    %293 = math.tanh %292 : vector<2x32xf32>
    %294 = arith.mulf %289, %293 : vector<2x32xf32>
    %295 = tpu.concatenate %261, %294 in 1 : vector<2x32xf32>, vector<2x32xf32> -> vector<2x64xf32>
    %cst_58 = arith.constant dense<0.000000e+00> : vector<2xf32>
    %296 = vector.multi_reduction <add>, %295, %cst_58 [1] : vector<2x64xf32> to vector<2xf32>
    %297 = vector.shape_cast %296 : vector<2xf32> to vector<2x1xf32>
    %cst_59 = arith.constant 6.400000e+01 : f32
    %298 = vector.broadcast %cst_59 : f32 to vector<2x1xf32>
    %299 = arith.divf %297, %298 : vector<2x1xf32>
    %300 = vector.broadcast %299 : vector<2x1xf32> to vector<2x64xf32>
    %301 = arith.subf %295, %300 : vector<2x64xf32>
    %302 = arith.mulf %301, %301 : vector<2x64xf32>
    %cst_60 = arith.constant dense<0.000000e+00> : vector<2xf32>
    %303 = vector.multi_reduction <add>, %302, %cst_60 [1] : vector<2x64xf32> to vector<2xf32>
    %304 = vector.shape_cast %303 : vector<2xf32> to vector<2x1xf32>
    %cst_61 = arith.constant 6.400000e+01 : f32
    %305 = vector.broadcast %cst_61 : f32 to vector<2x1xf32>
    %306 = arith.divf %304, %305 : vector<2x1xf32>
    %cst_62 = arith.constant 9.99999974E-6 : f32
    %307 = vector.broadcast %cst_62 : f32 to vector<2x1xf32>
    %308 = arith.addf %306, %307 : vector<2x1xf32>
    %309 = math.rsqrt %308 : vector<2x1xf32>
    %310 = vector.broadcast %309 : vector<2x1xf32> to vector<2x64xf32>
    %311 = arith.mulf %301, %310 : vector<2x64xf32>
    %c0_63 = arith.constant 0 : index
    %c0_64 = arith.constant 0 : index
    %312 = vector.load %arg7[%c0_63, %c0_64] : memref<1x64xf32, #tpu.memory_space<vmem>>, vector<1x64xf32>
    %313 = vector.broadcast %312 : vector<1x64xf32> to vector<2x64xf32>
    %314 = arith.mulf %311, %313 : vector<2x64xf32>
    %c0_65 = arith.constant 0 : index
    %c0_66 = arith.constant 0 : index
    %315 = vector.load %arg8[%c0_65, %c0_66] : memref<1x64xf32, #tpu.memory_space<vmem>>, vector<1x64xf32>
    %316 = vector.broadcast %315 : vector<1x64xf32> to vector<2x64xf32>
    %317 = arith.addf %314, %316 : vector<2x64xf32>
    %c0_67 = arith.constant 0 : index
    %c0_68 = arith.constant 0 : index
    %318 = vector.load %arg9[%c0_67, %c0_68] : memref<64x8xf32, #tpu.memory_space<vmem>>, vector<64x8xf32>
    %cst_69 = arith.constant dense<0.000000e+00> : vector<2x8xf32>
    %319 = tpu.matmul %317, %318, %cst_69 {dimension_numbers = #tpu.dot_dimension_numbers<[1], [0], [0], [1], [0, 0, 1, 1], [], []>} : vector<2x64xf32>, vector<64x8xf32>, vector<2x8xf32> -> vector<2x8xf32>
    %c0_70 = arith.constant 0 : index
    %c0_71 = arith.constant 0 : index
    %320 = vector.load %arg10[%c0_70, %c0_71] : memref<1x8xf32, #tpu.memory_space<vmem>>, vector<1x8xf32>
    %321 = vector.broadcast %320 : vector<1x8xf32> to vector<2x8xf32>
    %322 = arith.addf %319, %321 : vector<2x8xf32>
    %c0_72 = arith.constant 0 : index
    %c0_73 = arith.constant 0 : index
    %323 = vector.load %arg11[%c0_72, %c0_73] : memref<2x8xf32, #tpu.memory_space<vmem>>, vector<2x8xf32>
    tpu.vector_store %arg11[%c0_72, %c0_73], %322 {strides = array<i32>} : memref<2x8xf32, #tpu.memory_space<vmem>>, vector<2x8xf32>,
    return
  }
  func.func @transform_0(%arg0: i32) -> (i32, i32, i32) {
    %c0_i32 = arith.constant 0 : i32
    %c0_i32_0 = arith.constant 0 : i32
    %c0_i32_1 = arith.constant 0 : i32
    return %arg0, %c0_i32, %c0_i32_0 : i32, i32, i32
  }
  func.func @transform_1(%arg0: i32) -> (i32, i32) {
    %c0_i32 = arith.constant 0 : i32
    %c0_i32_0 = arith.constant 0 : i32
    %c0_i32_1 = arith.constant 0 : i32
    return %c0_i32, %c0_i32_0 : i32, i32
  }
  func.func @transform_2(%arg0: i32) -> (i32, i32) {
    %c0_i32 = arith.constant 0 : i32
    %c0_i32_0 = arith.constant 0 : i32
    %c0_i32_1 = arith.constant 0 : i32
    return %c0_i32, %c0_i32_0 : i32, i32
  }
  func.func @transform_3(%arg0: i32) -> (i32, i32) {
    %c0_i32 = arith.constant 0 : i32
    %c0_i32_0 = arith.constant 0 : i32
    %c0_i32_1 = arith.constant 0 : i32
    return %c0_i32, %c0_i32_0 : i32, i32
  }
  func.func @transform_4(%arg0: i32) -> (i32, i32) {
    %c0_i32 = arith.constant 0 : i32
    %c0_i32_0 = arith.constant 0 : i32
    %c0_i32_1 = arith.constant 0 : i32
    return %c0_i32, %c0_i32_0 : i32, i32
  }
  func.func @transform_5(%arg0: i32) -> (i32, i32) {
    %c0_i32 = arith.constant 0 : i32
    %c0_i32_0 = arith.constant 0 : i32
    %c0_i32_1 = arith.constant 0 : i32
    return %c0_i32, %c0_i32_0 : i32, i32
  }
  func.func @transform_6(%arg0: i32) -> (i32, i32) {
    %c0_i32 = arith.constant 0 : i32
    %c0_i32_0 = arith.constant 0 : i32
    %c0_i32_1 = arith.constant 0 : i32
    return %c0_i32, %c0_i32_0 : i32, i32
  }
  func.func @transform_7(%arg0: i32) -> (i32, i32) {
    %c0_i32 = arith.constant 0 : i32
    %c0_i32_0 = arith.constant 0 : i32
    %c0_i32_1 = arith.constant 0 : i32
    return %c0_i32, %c0_i32_0 : i32, i32
  }
  func.func @transform_8(%arg0: i32) -> (i32, i32) {
    %c0_i32 = arith.constant 0 : i32
    %c0_i32_0 = arith.constant 0 : i32
    %c0_i32_1 = arith.constant 0 : i32
    return %c0_i32, %c0_i32_0 : i32, i32
  }
  func.func @transform_9(%arg0: i32) -> (i32, i32) {
    %c0_i32 = arith.constant 0 : i32
    %c0_i32_0 = arith.constant 0 : i32
    %c0_i32_1 = arith.constant 0 : i32
    return %c0_i32, %c0_i32_0 : i32, i32
  }
  func.func @transform_10(%arg0: i32) -> (i32, i32) {
    %c0_i32 = arith.constant 0 : i32
    %c0_i32_0 = arith.constant 0 : i32
    return %arg0, %c0_i32 : i32, i32
  }
}

</mosaic_0001>

<bundles_post_ra>
// kernel: lstm_head_forward.1
= control target key start
LH: loop header
LB: loop body
LE: loop exit
PB: predicated region body
PF: predicated region fallthrough
CT: control target
= control target key end

     0   :  { %v2252_v3 = vmov 0.0|0.0   ;;  %vm2253_vm0 = vmmov 0   ;;  %v2254_v11 = vmov 0.0   ;;  %s2612_s0 = inlined_call_operand.vmem [shape: f32[2,8,32], index: 0, kind: input, shape index: {}]   ;;  %s2613_s1 = inlined_call_operand.vmem [shape: f32[32,128], index: 1, kind: input, shape index: {}]   ;;  %s2614_s2 = inlined_call_operand.vmem [shape: f32[32,128], index: 2, kind: input, shape index: {}]   ;;  %s2615_s3 = inlined_call_operand.vmem [shape: f32[1,128], index: 3, kind: input, shape index: {}]   ;;  %s2616_s4 = inlined_call_operand.vmem [shape: f32[32,128], index: 4, kind: input, shape index: {}]   ;;  %s2617_s5 = inlined_call_operand.vmem [shape: f32[1,128], index: 5, kind: input, shape index: {}]   ;;  %s2618_s6 = inlined_call_operand.vmem [shape: f32[1,64], index: 6, kind: input, shape index: {}]   ;;  %s2619_s7 = inlined_call_operand.vmem [shape: f32[1,64], index: 7, kind: input, shape index: {}]   ;;  %s2620_s8 = inlined_call_operand.vmem [shape: f32[64,8], index: 8, kind: input, shape index: {}]   ;;  %s2621_s9 = inlined_call_operand.vmem [shape: f32[1,8], index: 9, kind: input, shape index: {}]   ;;  %s2622_s10 = inlined_call_operand.hbm [shape: f32[2,8], index: 10, kind: output, shape index: {}]  }
   0x1   :  { %v42_v0 = vld [vmem:[%s2614_s2] sm:$0xff]  ;;  %v43_v1 = vld [vmem:[%s2614_s2 + $0x8] sm:$0xff]  ;;  %2034 = vmatprep.subr.bf16.mxu0 %v2252_v3  ;;  %2040 = vmatprep.subr.bf16.mxu1 %v2252_v3  ;;  %v44_v6 = vld [vmem:[%s2614_s2 + $0x10] sm:$0xff] }
   0x2   :  { %v38_v2 = vld [vmem:[%s2613_s1] sm:$0xff]  ;;  %v2324_v4 = vpack.c.bf16 %v43_v1, %v42_v0  ;;  %v39_v5 = vld [vmem:[%s2613_s1 + $0x8] sm:$0xff]  ;;  %v45_v7 = vld [vmem:[%s2614_s2 + $0x18] sm:$0xff]  ;;  %1836 = vmatprep.mubr.msk.f32.mxu0 %vm2253_vm0, %v2254_v11  ;;  %1847 = vmatprep.mubr.msk.f32.mxu1 %vm2253_vm0, %v2254_v11 }
   0x3   :  { %v2335_v8 = vpack.c.bf16 %v39_v5, %v38_v2  ;;  %v40_v9 = vld [vmem:[%s2613_s1 + $0x10] sm:$0xff]  ;;  %v41_v10 = vld [vmem:[%s2613_s1 + $0x18] sm:$0xff]  ;;  %v2348_v12 = vpack.c.bf16 %v45_v7, %v44_v6  ;;  %v2353_v13 = vld [vmem:[%s2612_s0 + $0x8] sm:$0xff] }
   0x4   :  { %2036 = vmatpush3.bf16.msra.mxu0 %v2324_v4 }
   0x5   :  { %15 = vsyncpa [#allocation3], 0  ;;  %2042 = vmatpush3.bf16.msra.mxu1 %v2335_v8  ;;  %2037 = vmatprep.subr.bf16.mxu0 %v2252_v3  ;;  %v2357_v14 = vpack.c.bf16 %v41_v10, %v40_v9  ;;  %v123_v15 = vrot.slane %v2353_v13, 7  ;;  %v2364_v16 = vld [vmem:[%s2612_s0] sm:$0xff]  ;;  %vm124_vm1 = vcmask 1041409   ;;  %vm47_vm2 = vcmask 261120  }
   0x6   :  { %2043 = vmatprep.subr.bf16.mxu1 %v2252_v3  ;;  %v2389_v19 = vld [vmem:[%s2615_s3] ss:$0 sm:$0xff]  ;;  %s2255_s12 = smov 64   ;;  %s2256_s3 = smov 32   ;;  %v304_v35 = vrot.slane %v2364_v16, 1  ;;  %v478_v57 = vrot.slane %v2364_v16, 2 }
   0x7   :  { %v125_v17 = vsel %vm124_vm1, %v123_v15, %v2364_v16  ;;  %v479_v58 = vrot.slane %v2353_v13, 1  ;;  %vm1567_vm3 = vcmask 517120   ;;  %vm1613_vm4 = vcmask 523264   ;;  %s2257_s18 = smov [#allocation2]  }
   0x8   :  { %2039 = vmatpush3.bf16.msra.mxu0 %v2348_v12  ;;  %v305_v36 = vsel %vm124_vm1, %v2353_v13, %v304_v35  ;;  %s1695_s19 = sshll.u32 %s2257_s18, 4  ;;  %vm1687_vm5 = vcmask 58368   ;;  %s1696_s19 = int_to_ptr.vmem [resolvable:$true] %s1695_s19 }
   0x9   :  { %2045 = vmatpush3.bf16.msra.mxu1 %v2357_v14  ;;  %2046 = vmatprep.subr.bf16.mxu0 %v2252_v3  ;;  %v480_v59 = vsel %vm124_vm1, %v479_v58, %v478_v57  ;;  %p2233_p1 = scmp.lt.s32.totalorder %s1696_s19, %s1696_s19 }
   0xa   :  { %2052 = vmatprep.subr.bf16.mxu1 %v2252_v3 }
   0xb   :  { %1837 = vmatmul.mubr.f32.vlgmr.msra.gmra.mrb[0].mxu0 %v2254_v11 }
   0xc   :  { %1848 = vmatmul.mubr.msk.f32.vlgmr.msra.gmra.mrb[0].mxu1 %vm47_vm2, %v125_v17  ;;  %2048 = vmatpush3.bf16.msra.mxu0 %v2324_v4 }
   0xd   :  { %2054 = vmatpush3.bf16.msra.mxu1 %v2335_v8  ;;  %2049 = vmatprep.subr.bf16.mxu0 %v2252_v3 }
   0xe   :  { %2055 = vmatprep.subr.bf16.mxu1 %v2252_v3  ;;  %1869 = vmatprep.mubr.msk.f32.mxu1 %vm2253_vm0, %v2254_v11 }
   0xf   :  { %1858 = vmatprep.mubr.msk.f32.mxu0 %vm2253_vm0, %v2254_v11 }
  0x10   :  { %2051 = vmatpush3.bf16.msra.mxu0 %v2348_v12 }
  0x11   :  { %2057 = vmatpush3.bf16.msra.mxu1 %v2357_v14  ;;  %2058 = vmatprep.subr.bf16.mxu0 %v2252_v3 }
  0x12   :  { %2064 = vmatprep.subr.bf16.mxu1 %v2252_v3 }
  0x14   :  { %1870 = vmatmul.mubr.msk.f32.vlgmr.msra.gmra.mrb[2].mxu1 %vm47_vm2, %v305_v36 }
  0x15   :  { %2066 = vmatpush3.bf16.msra.mxu1 %v2335_v8  ;;  %1891 = vmatprep.mubr.msk.f32.mxu1 %vm2253_vm0, %v2254_v11 }
  0x16   :  { %2067 = vmatprep.subr.bf16.mxu1 %v2252_v3 }
  0x19   :  { %2069 = vmatpush3.bf16.msra.mxu1 %v2357_v14 }
  0x1a   :  { %2076 = vmatprep.subr.bf16.mxu1 %v2252_v3 }
  0x1c   :  { %1892 = vmatmul.mubr.msk.f32.vlgmr.msra.gmra.mrb[4].mxu1 %vm47_vm2, %v480_v59 }
  0x1d   :  { %2078 = vmatpush3.bf16.msra.mxu1 %v2335_v8  ;;  %1913 = vmatprep.mubr.msk.f32.mxu1 %vm2253_vm0, %v2254_v11 }
  0x1e   :  { %2079 = vmatprep.subr.bf16.mxu1 %v2252_v3 }
  0x21   :  { %2081 = vmatpush3.bf16.msra.mxu1 %v2357_v14 }
  0x22   :  { %2088 = vmatprep.subr.bf16.mxu1 %v2252_v3 }
  0xde   :  { %v117_v18 = vpop.f32.mrb[0].mxu0 }
  0xdf   :  { %v194_v20 = vpop.f32.mrb[0].mxu1  ;;  %v1838_v21 = vpop.f32.mrb[1].mxu0 }
  0xe0   :  { %v195_v22 = vadd.f32 %v194_v20, %v117_v18  ;;  %v1849_v23 = vpop.f32.mrb[1].mxu1 }
  0xe2   :  { %v204_v24 = vadd.f32 %v2389_v19, %v195_v22 }
  0xe4   :  { %2154 = vtanh.f32 %v204_v24  ;;  %v1705_v26 = vmul.f32 -1.442695, %v204_v24 }
  0xe6   :  { %2156 = vpow2.f32 %v1705_v26  ;;  %v654_v26 = vrot.slane %v2353_v13, 2 }
  0xe7   :  { %v374_v40 = vpop.f32.mrb[2].mxu1 }
  0xe8   :  { %v1871_v41 = vpop.f32.mrb[3].mxu1 }
  0xee   :  { %v2155_v25 = vpop.eup %2154 }
  0xef   :  { %214 = vrot.lane.b32.xlu0 %v2155_v25, %s2255_s12  ;;  %v549_v63 = vpop.f32.mrb[4].mxu1  ;;  %v653_v25 = vrot.slane %v2364_v16, 3 }
  0xf0   :  { %v2157_v27 = vpop.eup %2156  ;;  %v1893_v0 = vpop.f32.mrb[5].mxu1 }
  0xf1   :  { %v208_v28 = vadd.f32 1.0, %v2157_v27  ;;  %v655_v27 = vsel %vm124_vm1, %v654_v26, %v653_v25 }
  0xf2   :  { %1914 = vmatmul.mubr.msk.f32.vlgmr.msra.gmra.mrb[6].mxu1 %vm47_vm2, %v655_v27 }
  0xf3   :  { %2158 = vrcp.f32 %v208_v28  ;;  %2090 = vmatpush3.bf16.msra.mxu1 %v2335_v8  ;;  %1935 = vmatprep.mubr.msk.f32.mxu1 %vm2253_vm0, %v2254_v11 }
  0xf4   :  { %2091 = vmatprep.subr.bf16.mxu1 %v2252_v3 }
  0xf7   :  { %2093 = vmatpush3.bf16.msra.mxu1 %v2357_v14 }
  0xf8   :  { %2100 = vmatprep.subr.bf16.mxu1 %v2252_v3 }
  0xfd   :  { %v2159_v29 = vpop.eup %2158 }
  0xfe   :  { %v212_v32 = vmul.f32 0.0, %v2159_v29 }
 0x161   :  { %v215_v30 = vpop.permute.xlu0 %214 }
 0x162   :  { %v217_v31 = vmul.f32 %v2159_v29, %v215_v30 }
 0x164   :  { %219 = vrot.lane.b32.xlu0 %v217_v31, %s2256_s3 }
 0x1c5   :  { %v724_v31 = vpop.f32.mrb[6].mxu1 }
 0x1d6   :  { %v220_v33 = vpop.permute.xlu0 %219 }
 0x1d7   :  { %v222_v34 = vadd.f32 %v220_v33, %v212_v32  ;;  %v1915_v32 = vpop.f32.mrb[7].mxu1 }
 0x1d9   :  { %2160 = vtanh.f32 %v222_v34 }
 0x1e3   :  { %v2161_v37 = vpop.eup %2160 }
 0x1e4   :  { %225 = vrot.lane.b32.xlu1 %v2161_v37, %s2255_s12 }
 0x256   :  { %v226_v38 = vpop.permute.xlu1 %225 }
 0x257   :  { %v228_v39 = vmul.f32 %v2159_v29, %v226_v38 }
 0x259   :  { %230 = vrot.lane.b32.xlu1 %v228_v39, %s2256_s3 }
 0x2cb   :  { %v231_v42 = vpop.permute.xlu1 %230 }
 0x2cc   :  { %1859 = vmatmul.mubr.msk.f32.vlgmr.msra.gmra.mrb[2].mxu0 %vm47_vm2, %v231_v42 }
 0x2cd   :  { %2060 = vmatpush3.bf16.msra.mxu0 %v2324_v4  ;;  %1880 = vmatprep.mubr.msk.f32.mxu0 %vm2253_vm0, %v2254_v11 }
 0x2ce   :  { %2061 = vmatprep.subr.bf16.mxu0 %v2252_v3 }
 0x2d1   :  { %2063 = vmatpush3.bf16.msra.mxu0 %v2348_v12 }
 0x2d2   :  { %2070 = vmatprep.subr.bf16.mxu0 %v2252_v3 }
 0x39f   :  { %v300_v43 = vpop.f32.mrb[2].mxu0 }
 0x3a0   :  { %v375_v44 = vadd.f32 %v374_v40, %v300_v43  ;;  %v1860_v45 = vpop.f32.mrb[3].mxu0 }
 0x3a2   :  { %v378_v46 = vadd.f32 %v2389_v19, %v375_v44 }
 0x3a4   :  { %2162 = vtanh.f32 %v378_v46  ;;  %v1708_v48 = vmul.f32 -1.442695, %v378_v46 }
 0x3a6   :  { %2164 = vpow2.f32 %v1708_v48  ;;  %v828_v48 = vrot.slane %v2364_v16, 4 }
 0x3ae   :  { %v2163_v47 = vpop.eup %2162 }
 0x3af   :  { %388 = vrot.lane.b32.xlu0 %v2163_v47, %s2255_s12 }
 0x3b0   :  { %v2165_v49 = vpop.eup %2164 }
 0x3b1   :  { %v382_v50 = vadd.f32 1.0, %v2165_v49  ;;  %v829_v49 = vrot.slane %v2353_v13, 3 }
 0x3b3   :  { %2166 = vrcp.f32 %v382_v50  ;;  %v830_v50 = vsel %vm124_vm1, %v829_v49, %v828_v48 }
 0x3b4   :  { %1936 = vmatmul.mubr.msk.f32.vlgmr.msra.gmra.mrb[8].mxu1 %vm47_vm2, %v830_v50 }
 0x3b5   :  { %2102 = vmatpush3.bf16.msra.mxu1 %v2335_v8  ;;  %1957 = vmatprep.mubr.msk.f32.mxu1 %vm2253_vm0, %v2254_v11 }
 0x3b6   :  { %2103 = vmatprep.subr.bf16.mxu1 %v2252_v3 }
 0x3b9   :  { %2105 = vmatpush3.bf16.msra.mxu1 %v2357_v14 }
 0x3ba   :  { %2112 = vmatprep.subr.bf16.mxu1 %v2252_v3 }
 0x3bd   :  { %v2167_v51 = vpop.eup %2166 }
 0x3be   :  { %v386_v54 = vmul.f32 %v2167_v51, %v222_v34 }
 0x421   :  { %v389_v52 = vpop.permute.xlu0 %388 }
 0x422   :  { %v391_v53 = vmul.f32 %v2167_v51, %v389_v52 }
 0x424   :  { %393 = vrot.lane.b32.xlu1 %v391_v53, %s2256_s3 }
 0x496   :  { %v394_v55 = vpop.permute.xlu1 %393 }
 0x497   :  { %v396_v56 = vadd.f32 %v394_v55, %v386_v54  ;;  %v899_v54 = vpop.f32.mrb[8].mxu1 }
 0x498   :  { %v1937_v55 = vpop.f32.mrb[9].mxu1 }
 0x499   :  { %2168 = vtanh.f32 %v396_v56 }
 0x4a3   :  { %v2169_v60 = vpop.eup %2168 }
 0x4a4   :  { %399 = vrot.lane.b32.xlu0 %v2169_v60, %s2255_s12 }
 0x516   :  { %v400_v61 = vpop.permute.xlu0 %399 }
 0x517   :  { %v402_v62 = vmul.f32 %v2167_v51, %v400_v61 }
 0x519   :  { %404 = vrot.lane.b32.xlu1 %v402_v62, %s2256_s3 }
 0x58b   :  { %v405_v1 = vpop.permute.xlu1 %404 }
 0x58c   :  { %1881 = vmatmul.mubr.msk.f32.vlgmr.msra.gmra.mrb[4].mxu0 %vm47_vm2, %v405_v1 }
 0x58d   :  { %2072 = vmatpush3.bf16.msra.mxu0 %v2324_v4  ;;  %1902 = vmatprep.mubr.msk.f32.mxu0 %vm2253_vm0, %v2254_v11 }
 0x58e   :  { %2073 = vmatprep.subr.bf16.mxu0 %v2252_v3 }
 0x591   :  { %2075 = vmatpush3.bf16.msra.mxu0 %v2348_v12 }
 0x592   :  { %2082 = vmatprep.subr.bf16.mxu0 %v2252_v3 }
 0x65f   :  { %v474_v2 = vpop.f32.mrb[4].mxu0 }
 0x660   :  { %v550_v5 = vadd.f32 %v549_v63, %v474_v2  ;;  %v1882_v6 = vpop.f32.mrb[5].mxu0 }
 0x662   :  { %v553_v7 = vadd.f32 %v2389_v19, %v550_v5 }
 0x664   :  { %2170 = vtanh.f32 %v553_v7  ;;  %v1711_v10 = vmul.f32 -1.442695, %v553_v7 }
 0x666   :  { %2172 = vpow2.f32 %v1711_v10  ;;  %v1003_v10 = vrot.slane %v2364_v16, 5 }
 0x66e   :  { %v2171_v9 = vpop.eup %2170 }
 0x66f   :  { %563 = vrot.lane.b32.xlu0 %v2171_v9, %s2255_s12 }
 0x670   :  { %v2173_v15 = vpop.eup %2172 }
 0x671   :  { %v557_v17 = vadd.f32 1.0, %v2173_v15  ;;  %v1004_v15 = vrot.slane %v2353_v13, 4 }
 0x673   :  { %2174 = vrcp.f32 %v557_v17  ;;  %v1005_v17 = vsel %vm124_vm1, %v1004_v15, %v1003_v10 }
 0x674   :  { %1958 = vmatmul.mubr.msk.f32.vlgmr.msra.gmra.mrb[10].mxu1 %vm47_vm2, %v1005_v17 }
 0x675   :  { %2114 = vmatpush3.bf16.msra.mxu1 %v2335_v8  ;;  %1979 = vmatprep.mubr.msk.f32.mxu1 %vm2253_vm0, %v2254_v11 }
 0x676   :  { %2115 = vmatprep.subr.bf16.mxu1 %v2252_v3 }
 0x679   :  { %2117 = vmatpush3.bf16.msra.mxu1 %v2357_v14 }
 0x67a   :  { %2124 = vmatprep.subr.bf16.mxu1 %v2252_v3 }
 0x67d   :  { %v2175_v18 = vpop.eup %2174 }
 0x67e   :  { %v561_v22 = vmul.f32 %v2175_v18, %v396_v56 }
 0x6e1   :  { %v564_v20 = vpop.permute.xlu0 %563 }
 0x6e2   :  { %v566_v21 = vmul.f32 %v2175_v18, %v564_v20 }
 0x6e4   :  { %568 = vrot.lane.b32.xlu1 %v566_v21, %s2256_s3 }
 0x756   :  { %v569_v23 = vpop.permute.xlu1 %568 }
 0x757   :  { %v571_v24 = vadd.f32 %v569_v23, %v561_v22  ;;  %v1074_v22 = vpop.f32.mrb[10].mxu1 }
 0x758   :  { %v1959_v23 = vpop.f32.mrb[11].mxu1 }
 0x759   :  { %2176 = vtanh.f32 %v571_v24 }
 0x763   :  { %v2177_v28 = vpop.eup %2176 }
 0x764   :  { %574 = vrot.lane.b32.xlu0 %v2177_v28, %s2255_s12 }
 0x7d6   :  { %v575_v29 = vpop.permute.xlu0 %574 }
 0x7d7   :  { %v577_v30 = vmul.f32 %v2175_v18, %v575_v29 }
 0x7d9   :  { %579 = vrot.lane.b32.xlu1 %v577_v30, %s2256_s3 }
 0x84b   :  { %v580_v33 = vpop.permute.xlu1 %579 }
 0x84c   :  { %1903 = vmatmul.mubr.msk.f32.vlgmr.msra.gmra.mrb[6].mxu0 %vm47_vm2, %v580_v33 }
 0x84d   :  { %2084 = vmatpush3.bf16.msra.mxu0 %v2324_v4  ;;  %1924 = vmatprep.mubr.msk.f32.mxu0 %vm2253_vm0, %v2254_v11 }
 0x84e   :  { %2085 = vmatprep.subr.bf16.mxu0 %v2252_v3 }
 0x851   :  { %2087 = vmatpush3.bf16.msra.mxu0 %v2348_v12 }
 0x852   :  { %2094 = vmatprep.subr.bf16.mxu0 %v2252_v3 }
 0x91f   :  { %v649_v34 = vpop.f32.mrb[6].mxu0 }
 0x920   :  { %v725_v35 = vadd.f32 %v724_v31, %v649_v34  ;;  %v1904_v36 = vpop.f32.mrb[7].mxu0 }
 0x922   :  { %v728_v37 = vadd.f32 %v2389_v19, %v725_v35 }
 0x924   :  { %2178 = vtanh.f32 %v728_v37  ;;  %v1714_v39 = vmul.f32 -1.442695, %v728_v37 }
 0x926   :  { %2180 = vpow2.f32 %v1714_v39  ;;  %v1178_v39 = vrot.slane %v2364_v16, 6 }
 0x92e   :  { %v2179_v38 = vpop.eup %2178 }
 0x92f   :  { %738 = vrot.lane.b32.xlu0 %v2179_v38, %s2255_s12 }
 0x930   :  { %v2181_v40 = vpop.eup %2180 }
 0x931   :  { %v732_v41 = vadd.f32 1.0, %v2181_v40  ;;  %v1179_v40 = vrot.slane %v2353_v13, 5 }
 0x933   :  { %2182 = vrcp.f32 %v732_v41  ;;  %v1180_v41 = vsel %vm124_vm1, %v1179_v40, %v1178_v39 }
 0x934   :  { %1980 = vmatmul.mubr.msk.f32.vlgmr.msra.gmra.mrb[12].mxu1 %vm47_vm2, %v1180_v41 }
 0x935   :  { %2126 = vmatpush3.bf16.msra.mxu1 %v2335_v8  ;;  %2001 = vmatprep.mubr.msk.f32.mxu1 %vm2253_vm0, %v2254_v11 }
 0x936   :  { %2127 = vmatprep.subr.bf16.mxu1 %v2252_v3 }
 0x939   :  { %2129 = vmatpush3.bf16.msra.mxu1 %v2357_v14 }
 0x93a   :  { %2136 = vmatprep.subr.bf16.mxu1 %v2252_v3 }
 0x93d   :  { %v2183_v42 = vpop.eup %2182 }
 0x93e   :  { %v736_v45 = vmul.f32 %v2183_v42, %v571_v24 }
 0x9a1   :  { %v739_v43 = vpop.permute.xlu0 %738 }
 0x9a2   :  { %v741_v44 = vmul.f32 %v2183_v42, %v739_v43 }
 0x9a4   :  { %743 = vrot.lane.b32.xlu1 %v741_v44, %s2256_s3 }
 0xa16   :  { %v744_v46 = vpop.permute.xlu1 %743 }
 0xa17   :  { %v746_v47 = vadd.f32 %v744_v46, %v736_v45  ;;  %v1249_v45 = vpop.f32.mrb[12].mxu1 }
 0xa18   :  { %v1981_v46 = vpop.f32.mrb[13].mxu1 }
 0xa19   :  { %2184 = vtanh.f32 %v746_v47 }
 0xa23   :  { %v2185_v51 = vpop.eup %2184 }
 0xa24   :  { %749 = vrot.lane.b32.xlu0 %v2185_v51, %s2255_s12 }
 0xa96   :  { %v750_v52 = vpop.permute.xlu0 %749 }
 0xa97   :  { %v752_v53 = vmul.f32 %v2183_v42, %v750_v52 }
 0xa99   :  { %754 = vrot.lane.b32.xlu1 %v752_v53, %s2256_s3 }
 0xb0b   :  { %v755_v56 = vpop.permute.xlu1 %754 }
 0xb0c   :  { %1925 = vmatmul.mubr.msk.f32.vlgmr.msra.gmra.mrb[8].mxu0 %vm47_vm2, %v755_v56 }
 0xb0d   :  { %2096 = vmatpush3.bf16.msra.mxu0 %v2324_v4  ;;  %1946 = vmatprep.mubr.msk.f32.mxu0 %vm2253_vm0, %v2254_v11 }
 0xb0e   :  { %2097 = vmatprep.subr.bf16.mxu0 %v2252_v3 }
 0xb11   :  { %2099 = vmatpush3.bf16.msra.mxu0 %v2348_v12 }
 0xb12   :  { %2106 = vmatprep.subr.bf16.mxu0 %v2252_v3 }
 0xbdf   :  { %v824_v57 = vpop.f32.mrb[8].mxu0 }
 0xbe0   :  { %v900_v58 = vadd.f32 %v899_v54, %v824_v57  ;;  %v1926_v59 = vpop.f32.mrb[9].mxu0 }
 0xbe1   :  { %v1353_v59 = vrot.slane %v2364_v16, 7  ;;  %v1454_v16 = vld [vmem:[%s2616_s4 + $0x8] sm:$0xff] }
 0xbe2   :  { %v903_v60 = vadd.f32 %v2389_v19, %v900_v58 }
 0xbe4   :  { %2186 = vtanh.f32 %v903_v60  ;;  %v1717_v62 = vmul.f32 -1.442695, %v903_v60  ;;  %v1354_v60 = vrot.slane %v2353_v13, 6 }
 0xbe6   :  { %2188 = vpow2.f32 %v1717_v62 }
 0xbee   :  { %v2187_v61 = vpop.eup %2186 }
 0xbef   :  { %913 = vrot.lane.b32.xlu0 %v2187_v61, %s2255_s12  ;;  %v1355_v61 = vsel %vm124_vm1, %v1354_v60, %v1353_v59  ;;  %v1602_v59 = vld [vmem:[%s2620_s8 + $0x20] sm:$0xff]  ;;  %v1603_v60 = vld [vmem:[%s2620_s8 + $0x28] sm:$0xff] }
 0xbf0   :  { %v2189_v63 = vpop.eup %2188  ;;  %2002 = vmatmul.mubr.msk.f32.vlgmr.msra.gmra.mrb[14].mxu1 %vm47_vm2, %v1355_v61 }
 0xbf1   :  { %v907_v0 = vadd.f32 1.0, %v2189_v63  ;;  %2031 = vmatprep.mubr.msk.f32.mxu1 %vm2253_vm0, %v2254_v11 }
 0xbf3   :  { %2190 = vrcp.f32 %v907_v0  ;;  %v1453_v0 = vld [vmem:[%s2616_s4] sm:$0xff] }
 0xbf4   :  { %v2131_v13 = vpack.c.bf16 %v1454_v16, %v1453_v0 }
 0xbfd   :  { %v2191_v1 = vpop.eup %2190 }
 0xbfe   :  { %v911_v6 = vmul.f32 %v2191_v1, %v746_v47 }
 0xc61   :  { %v914_v2 = vpop.permute.xlu0 %913 }
 0xc62   :  { %v916_v5 = vmul.f32 %v2191_v1, %v914_v2  ;;  %v1456_v2 = vld [vmem:[%s2616_s4 + $0x18] sm:$0xff] }
 0xc64   :  { %918 = vrot.lane.b32.xlu1 %v916_v5, %s2256_s3 }
 0xcd6   :  { %v919_v7 = vpop.permute.xlu1 %918 }
 0xcd7   :  { %v921_v9 = vadd.f32 %v919_v7, %v911_v6  ;;  %v1424_v7 = vpop.f32.mrb[14].mxu1 }
 0xcd9   :  { %2192 = vtanh.f32 %v921_v9 }
 0xce3   :  { %v2193_v18 = vpop.eup %2192 }
 0xce4   :  { %924 = vrot.lane.b32.xlu0 %v2193_v18, %s2255_s12 }
 0xd56   :  { %v925_v20 = vpop.permute.xlu0 %924 }
 0xd57   :  { %v927_v21 = vmul.f32 %v2191_v1, %v925_v20  ;;  %v1455_v1 = vld [vmem:[%s2616_s4 + $0x10] sm:$0xff]  ;;  %v1727_v20 = vld [vmem:[%s2617_s5] ss:$0 sm:$0xff] }
 0xd58   :  { %v2134_v6 = vpack.c.bf16 %v1456_v2, %v1455_v1 }
 0xd59   :  { %929 = vrot.lane.b32.xlu1 %v927_v21, %s2256_s3 }
 0xdcb   :  { %v930_v24 = vpop.permute.xlu1 %929 }
 0xdcc   :  { %1947 = vmatmul.mubr.msk.f32.vlgmr.msra.gmra.mrb[10].mxu0 %vm47_vm2, %v930_v24 }
 0xdcd   :  { %2108 = vmatpush3.bf16.msra.mxu0 %v2324_v4  ;;  %1968 = vmatprep.mubr.msk.f32.mxu0 %vm2253_vm0, %v2254_v11 }
 0xdce   :  { %2109 = vmatprep.subr.bf16.mxu0 %v2252_v3 }
 0xdd1   :  { %2111 = vmatpush3.bf16.msra.mxu0 %v2348_v12 }
 0xdd2   :  { %2118 = vmatprep.subr.bf16.mxu0 %v2252_v3 }
 0xe9f   :  { %v999_v25 = vpop.f32.mrb[10].mxu0 }
 0xea0   :  { %v1075_v26 = vadd.f32 %v1074_v22, %v999_v25  ;;  %v1948_v27 = vpop.f32.mrb[11].mxu0 }
 0xea2   :  { %v1078_v28 = vadd.f32 %v2389_v19, %v1075_v26 }
 0xea4   :  { %2194 = vtanh.f32 %v1078_v28  ;;  %v1720_v30 = vmul.f32 -1.442695, %v1078_v28 }
 0xea6   :  { %2196 = vpow2.f32 %v1720_v30 }
 0xeae   :  { %v2195_v29 = vpop.eup %2194 }
 0xeaf   :  { %1088 = vrot.lane.b32.xlu0 %v2195_v29, %s2255_s12 }
 0xeb0   :  { %v2197_v31 = vpop.eup %2196 }
 0xeb1   :  { %v1082_v32 = vadd.f32 1.0, %v2197_v31 }
 0xeb3   :  { %2198 = vrcp.f32 %v1082_v32 }
 0xebd   :  { %v2199_v33 = vpop.eup %2198 }
 0xebe   :  { %v1086_v36 = vmul.f32 %v2199_v33, %v921_v9  ;;  %v2003_v9 = vpop.f32.mrb[15].mxu1 }
 0xf21   :  { %v1089_v34 = vpop.permute.xlu0 %1088 }
 0xf22   :  { %v1091_v35 = vmul.f32 %v2199_v33, %v1089_v34 }
 0xf24   :  { %1093 = vrot.lane.b32.xlu1 %v1091_v35, %s2256_s3 }
 0xf96   :  { %v1094_v37 = vpop.permute.xlu1 %1093 }
 0xf97   :  { %v1096_v38 = vadd.f32 %v1094_v37, %v1086_v36 }
 0xf99   :  { %2200 = vtanh.f32 %v1096_v38 }
 0xfa3   :  { %v2201_v42 = vpop.eup %2200 }
 0xfa4   :  { %1099 = vrot.lane.b32.xlu0 %v2201_v42, %s2255_s12 }
0x1016   :  { %v1100_v43 = vpop.permute.xlu0 %1099 }
0x1017   :  { %v1102_v44 = vmul.f32 %v2199_v33, %v1100_v43 }
0x1019   :  { %1104 = vrot.lane.b32.xlu1 %v1102_v44, %s2256_s3 }
0x108b   :  { %v1105_v47 = vpop.permute.xlu1 %1104 }
0x108c   :  { %1969 = vmatmul.mubr.msk.f32.vlgmr.msra.gmra.mrb[12].mxu0 %vm47_vm2, %v1105_v47 }
0x108d   :  { %2120 = vmatpush3.bf16.msra.mxu0 %v2324_v4  ;;  %1990 = vmatprep.mubr.msk.f32.mxu0 %vm2253_vm0, %v2254_v11 }
0x108e   :  { %2121 = vmatprep.subr.bf16.mxu0 %v2252_v3 }
0x1091   :  { %2123 = vmatpush3.bf16.msra.mxu0 %v2348_v12 }
0x1092   :  { %2130 = vmatprep.subr.bf16.mxu0 %v2252_v3 }
0x115f   :  { %v1174_v8 = vpop.f32.mrb[12].mxu0 }
0x1160   :  { %v1250_v14 = vadd.f32 %v1249_v45, %v1174_v8  ;;  %v1970_v48 = vpop.f32.mrb[13].mxu0 }
0x1162   :  { %v1253_v49 = vadd.f32 %v2389_v19, %v1250_v14 }
0x1164   :  { %2202 = vtanh.f32 %v1253_v49  ;;  %v1723_v51 = vmul.f32 -1.442695, %v1253_v49 }
0x1166   :  { %2204 = vpow2.f32 %v1723_v51 }
0x116e   :  { %v2203_v50 = vpop.eup %2202 }
0x116f   :  { %1263 = vrot.lane.b32.xlu0 %v2203_v50, %s2255_s12 }
0x1170   :  { %v2205_v4 = vpop.eup %2204 }
0x1171   :  { %v1257_v52 = vadd.f32 1.0, %v2205_v4 }
0x1173   :  { %2206 = vrcp.f32 %v1257_v52 }
0x117d   :  { %v2207_v53 = vpop.eup %2206 }
0x117e   :  { %v1261_v12 = vmul.f32 %v2207_v53, %v1096_v38 }
0x11e1   :  { %v1264_v54 = vpop.permute.xlu0 %1263 }
0x11e2   :  { %v1266_v55 = vmul.f32 %v2207_v53, %v1264_v54  ;;  %v1598_v54 = vld [vmem:[%s2620_s8] sm:$0xff] }
0x11e4   :  { %1268 = vrot.lane.b32.xlu1 %v1266_v55, %s2256_s3  ;;  %v1599_v55 = vld [vmem:[%s2620_s8 + $0x8] sm:$0xff] }
0x1256   :  { %v1269_v56 = vpop.permute.xlu1 %1268 }
0x1257   :  { %v1271_v57 = vadd.f32 %v1269_v56, %v1261_v12  ;;  %v2137_v12 = vpack.c.bf16 %v1599_v55, %v1598_v54  ;;  %v1600_v56 = vld [vmem:[%s2620_s8 + $0x10] sm:$0xff] }
0x1259   :  { %2208 = vtanh.f32 %v1271_v57  ;;  %2138 = vmatpush3.bf16.msra.mxu1 %v2137_v12 }
0x125a   :  { %2139 = vmatprep.subr.bf16.mxu1 %v2252_v3 }
0x1263   :  { %v2209_v58 = vpop.eup %2208 }
0x1264   :  { %1274 = vrot.lane.b32.xlu0 %v2209_v58, %s2255_s12 }
0x12d6   :  { %v1275_v62 = vpop.permute.xlu0 %1274 }
0x12d7   :  { %v1277_v63 = vmul.f32 %v2207_v53, %v1275_v62  ;;  %v1604_v62 = vld [vmem:[%s2620_s8 + $0x30] sm:$0xff] }
0x12d9   :  { %1279 = vrot.lane.b32.xlu1 %v1277_v63, %s2256_s3  ;;  %v1605_v63 = vld [vmem:[%s2620_s8 + $0x38] sm:$0xff] }
0x12da   :  { %v2146_v0 = vpack.c.bf16 %v1605_v63, %v1604_v62 }
0x134b   :  { %v1280_v5 = vpop.permute.xlu1 %1279 }
0x134c   :  { %1991 = vmatmul.mubr.msk.f32.vlgmr.msra.gmra.mrb[14].mxu0 %vm47_vm2, %v1280_v5  ;;  %v1730_v5 = vld [vmem:[%s2618_s6] ss:$0 sm:$0xff]  ;;  %s2228_s6 = scalar_lea.vmem %s1696_s19, 32 }
0x134d   :  { %2132 = vmatpush3.bf16.msra.mxu0 %v2131_v13  ;;  %2012 = vmatprep.mubr.msk.f32.mxu0 %vm2253_vm0, %v2254_v11  ;;  %p2229_p0 = scmp.ne.s32.totalorder %s1696_s19, %s2228_s6  ;;  %p2234_p2 = scmp.lt.s32.totalorder %s2228_s6, %s2228_s6 }
0x134e   :  { %2133 = vmatprep.subr.bf16.mxu0 %v2252_v3 }
0x134f   :  { %p2235_p3 = por %p2234_p2, %p2233_p1 }
0x1351   :  { %2135 = vmatpush3.bf16.msra.mxu0 %v2134_v6  ;;  %v1731_v6 = vld [vmem:[%s2619_s7] ss:$0 sm:$0xff]  ;;  %p2236_p4 = pnand %p2235_p3, %p2229_p0 }
0x1354   :  { %2013 = vmatmul.mubr.msk.f32.vlgmr.msra.gmra.mrb[16].mxu0 %vm47_vm2, %v1355_v61  ;;  %v2143_v61 = vpack.c.bf16 %v1603_v60, %v1602_v59 }
0x141f   :  { %v1349_v10 = vpop.f32.mrb[14].mxu0 }
0x1420   :  { %v1425_v15 = vadd.f32 %v1424_v7, %v1349_v10  ;;  %v1992_v17 = vpop.f32.mrb[15].mxu0  ;;  %v1732_v10 = vld [vmem:[%s2621_s9] ss:$0 sm:$0xff] }
0x1422   :  { %v1428_v18 = vadd.f32 %v2389_v19, %v1425_v15 }
0x1424   :  { %2210 = vtanh.f32 %v1428_v18  ;;  %v1726_v25 = vmul.f32 -1.442695, %v1428_v18 }
0x1427   :  { %v1530_v21 = vpop.f32.mrb[16].mxu0 }
0x1428   :  { %v1531_v22 = vadd.f32 %v1727_v20, %v1530_v21  ;;  %v2014_v11 = vpop.f32.mrb[17].mxu0 }
0x142a   :  { %2212 = vtanh.f32 %v1531_v22  ;;  %v1729_v26 = vmul.f32 -1.442695, %v1531_v22 }
0x142b   :  { %2214 = vpow2.f32 %v1726_v25 }
0x142c   :  { %2216 = vpow2.f32 %v1729_v26 }
0x142e   :  { %v2211_v23 = vpop.eup %2210 }
0x142f   :  { %1438 = vrot.lane.b32.xlu0 %v2211_v23, %s2255_s12 }
0x1434   :  { %v2213_v24 = vpop.eup %2212 }
0x1435   :  { %1543 = vrot.lane.b32.xlu1 %v2213_v24, %s2255_s12  ;;  %v2215_v19 = vpop.eup %2214 }
0x1436   :  { %v1432_v27 = vadd.f32 1.0, %v2215_v19  ;;  %v2217_v28 = vpop.eup %2216 }
0x1437   :  { %v1537_v29 = vadd.f32 1.0, %v2217_v28 }
0x1438   :  { %2218 = vrcp.f32 %v1432_v27 }
0x1439   :  { %2220 = vrcp.f32 %v1537_v29 }
0x1442   :  { %v2219_v30 = vpop.eup %2218 }
0x1443   :  { %v2221_v33 = vpop.eup %2220  ;;  %v1436_v36 = vmul.f32 %v2219_v30, %v1271_v57  ;;  %v1601_v57 = vld [vmem:[%s2620_s8 + $0x18] sm:$0xff] }
0x1444   :  { %v1541_v39 = vmul.f32 0.0, %v2221_v33  ;;  %v2140_v58 = vpack.c.bf16 %v1601_v57, %v1600_v56 }
0x1446   :  { %2141 = vmatpush3.bf16.msra.mxu1 %v2140_v58 }
0x1447   :  { %2142 = vmatprep.subr.bf16.mxu1 %v2252_v3 }
0x144a   :  { %2144 = vmatpush3.bf16.msra.mxu1 %v2143_v61 }
0x144b   :  { %2145 = vmatprep.subr.bf16.mxu1 %v2252_v3 }
0x144e   :  { %2147 = vmatpush3.bf16.msra.mxu1 %v2146_v0 }
0x14a1   :  { %v1439_v31 = vpop.permute.xlu0 %1438 }
0x14a2   :  { %v1441_v32 = vmul.f32 %v2219_v30, %v1439_v31 }
0x14a4   :  { %1443 = vrot.lane.b32.xlu0 %v1441_v32, %s2256_s3 }
0x14a7   :  { %v1544_v34 = vpop.permute.xlu1 %1543 }
0x14a8   :  { %v1546_v35 = vmul.f32 %v2221_v33, %v1544_v34 }
0x14aa   :  { %1548 = vrot.lane.b32.xlu1 %v1546_v35, %s2256_s3 }
0x1516   :  { %v1444_v37 = vpop.permute.xlu0 %1443 }
0x1517   :  { %v1446_v38 = vadd.f32 %v1444_v37, %v1436_v36 }
0x1519   :  { %2222 = vtanh.f32 %v1446_v38 }
0x151c   :  { %v1549_v40 = vpop.permute.xlu1 %1548 }
0x151d   :  { %v1551_v41 = vadd.f32 %v1549_v40, %v1541_v39 }
0x151f   :  { %2224 = vtanh.f32 %v1551_v41 }
0x1523   :  { %v2223_v42 = vpop.eup %2222 }
0x1524   :  { %1449 = vrot.lane.b32.xlu0 %v2223_v42, %s2255_s12 }
0x1529   :  { %v2225_v43 = vpop.eup %2224 }
0x152a   :  { %1554 = vrot.lane.b32.xlu1 %v2225_v43, %s2255_s12 }
0x1596   :  { %v1450_v44 = vpop.permute.xlu0 %1449 }
0x1597   :  { %v1452_v45 = vmul.f32 %v2219_v30, %v1450_v44 }
0x1599   :  { %1559 = vrot.lane.b32.xlu0 %v1452_v45, %s2256_s3 }
0x159c   :  { %v1555_v46 = vpop.permute.xlu1 %1554 }
0x159d   :  { %v1557_v47 = vmul.f32 %v2221_v33, %v1555_v46 }
0x159f   :  { %1563 = vrot.lane.b32.xlu1 %v1557_v47, %s2255_s12 }
0x160b   :  { %v1560_v8 = vpop.permute.xlu0 %1559 }
0x1611   :  { %v1564_v14 = vpop.permute.xlu1 %1563 }
0x1612   :  { %v1566_v48 = vsel %vm47_vm2, %v1560_v8, %v1564_v14 }
0x1613   :  { %v1568_v49 = vsel %vm1567_vm3, %v1566_v48, 0.0 }
0x1614   :  { %1569 = vadd.xlane.f32.xlu0 %v1568_v49 }
0x16a1   :  { %v1570_v50 = vpop.xlane.xlu0 %1569 }
0x16a2   :  { %v1572_v51 = vmul.f32 0.015625, %v1570_v50 }
0x16a4   :  { %v1573_v4 = vsub.f32 %v1566_v48, %v1572_v51 }
0x16a6   :  { %v1574_v52 = vmul.f32 %v1573_v4, %v1573_v4 }
0x16a8   :  { %v1575_v53 = vsel %vm1567_vm3, %v1574_v52, 0.0 }
0x16a9   :  { %1576 = vadd.xlane.f32.xlu1 %v1575_v53 }
0x1736   :  { %v1577_v16 = vpop.xlane.xlu1 %1576 }
0x1737   :  { %v1578_v13 = vmul.f32 0.015625, %v1577_v16 }
0x1739   :  { %v1579_v1 = vadd.f32 1e-05, %v1578_v13 }
0x173b   :  { %2226 = vrsqrt.f32 %v1579_v1 }
0x1745   :  { %v2227_v2 = vpop.eup %2226 }
0x1746   :  { %v1581_v3 = vmul.f32 %v2227_v2, %v1573_v4 }
0x1748   :  { %v1589_v7 = vmul.f32 %v1730_v5, %v1581_v3 }
0x174a   :  { %v1597_v9 = vadd.f32 %v1731_v6, %v1589_v7 }
0x174c   :  { %2032 = vmatmul.mubr.msk.f32.vlgmr.msra.gmra.mrb[16].mxu1 %vm1613_vm4, %v1597_v9 }
0x181f   :  { %v1683_v15 = vpop.f32.mrb[16].mxu1 }
0x1820   :  { %v1684_v17 = vadd.f32 %v1732_v10, %v1683_v15  ;;  %v2033_v18 = vpop.f32.mrb[17].mxu1 }
0x1822   :  { %1688 = vst.msk [vmem:[#allocation2] sm:$0x3] %vm1687_vm5, %v1684_v17 }
0x1823   :  { %2239 = shalt.err (!%p2236_p4)
}
0x1824   :  { %s2240_s4 = scalar_lea.hbm %s2622_s10, 32 }
0x1825   :  { %p2241_p5 = scmp.ne.s32.totalorder %s2622_s10, %s2240_s4  ;;  %p2244_p6 = scmp.lt.u32.totalorder %s2240_s4, %s2622_s10 }
0x1827   :  { %p2246_p7 = pnand %p2244_p6, %p2241_p5 }
0x1829   :  { %2249 = shalt.err (!%p2246_p7)
}
0x182a   :  { %1698 = dma.vmem_to_hbm [thread:$0]  %s1696_s19, 32, %s2622_s10, [#allocation3]  }
0x182b   :  { %2250 = dma.done.wait [#allocation3], 32  }
0x182c   :  { %2251 = vsyncadd [#allocation3], 4294967264 }
0x182d   :  { %1702 = vsyncpa [#allocation3], 1 }

</bundles_post_ra>
